<compile_context>
chip_gen: v7x
topology: tpu7x:2x2x1
jax: 0.10.0
libtpu: 0.0.40
codegen_flags: <defaults>
</compile_context>

<pallas_src>
import jax
import jax.numpy as jnp
from jax import lax
from jax.experimental import pallas as pl
from jax.experimental.pallas import tpu as pltpu

B = 2     # batch
F = 20    # features (in == out == 20)

# Packed-parameter layout (row ranges chosen so each section starts on an
# 8-sublane boundary):
#   rows  0:20  -> W^T  (pre-transposed nn.Linear weight)
#   rows 24:44  -> rand_weight
#   row  48     -> bias
_WT_ROW = 0
_RW_ROW = 24
_B_ROW = 48
_P_ROWS = 56            # padded to a multiple of 8 sublanes

_LN2 = 0.6931471805599453


def fixed_hidden_mlp_kernel(x_ref, p_ref, out_ref):
    x = x_ref[...]                               # (B, F) f32
    wt = p_ref[_WT_ROW:_WT_ROW + F, :]           # (F, F) f32  = W^T
    rw = p_ref[_RW_ROW:_RW_ROW + F, :]           # (F, F) f32  fixed random weight
    bias = p_ref[_B_ROW:_B_ROW + 1, :]           # (1, F) f32

    # X = self.linear(X)  ==  X @ W^T + b   (W^T already packed: no transpose here)
    h = jnp.dot(x, wt, preferred_element_type=jnp.float32) + bias
    # X = relu(mm(X, rand_weight) + 1)
    h = jnp.maximum(jnp.dot(h, rw, preferred_element_type=jnp.float32) + 1.0, 0.0)
    # X = self.linear(X)
    h = jnp.dot(h, wt, preferred_element_type=jnp.float32) + bias

    # Reduce sublanes first on the VPU (B == 2 rows), then one lane reduction each.
    row_sum = h[0:1, :] + h[1:2, :]                          # (1, F)
    row_abs = jnp.abs(h[0:1, :]) + jnp.abs(h[1:2, :])        # (1, F)
    total = jnp.sum(row_sum, axis=1, keepdims=True)          # (1, 1)
    abs_total = jnp.sum(row_abs, axis=1, keepdims=True)      # (1, 1)

    # while X.abs().sum() > 1: X /= 2   -- closed form.
    # Halving X scales both sums by exactly 1/2, so the loop runs
    #   k = max(0, ceil(log2(abs_total))) times, and the result is total * 2^-k.
    # (abs_total == 0 -> log -> -inf -> k = 0; NaN propagates, matching PyTorch.)
    log2_abs = jnp.log(abs_total) * (1.0 / _LN2)             # EUP log
    k = jnp.maximum(jnp.ceil(log2_abs), 0.0)                 # (1, 1) f32, integer-valued
    scale = jnp.exp(k * (-_LN2))                             # 2^-k via EUP exp
    final = total * scale                                    # (1, 1)

    # Reduce-to-scalar of the (1,1) result, then scalar store into SMEM.
    out_ref[0, 0] = jnp.sum(final)


def pack_params(w, b, rw):
    """Pack W^T, rand_weight and bias into one contiguous VMEM slab (one DMA)."""
    p = jnp.zeros((_P_ROWS, F), jnp.float32)
    p = p.at[_WT_ROW:_WT_ROW + F, :].set(w.T)     # transpose once, outside the kernel
    p = p.at[_RW_ROW:_RW_ROW + F, :].set(rw)
    p = p.at[_B_ROW, :].set(b)
    return p


def fixed_hidden_mlp(x, w, b, rw):
    params = pack_params(w, b, rw)
    out = pl.pallas_call(
        fixed_hidden_mlp_kernel,
        out_shape=jax.ShapeDtypeStruct((1, 1), jnp.float32),
        in_specs=[
            pl.BlockSpec((B, F), lambda: (0, 0)),
            pl.BlockSpec((_P_ROWS, F), lambda: (0, 0)),
        ],
        out_specs=pl.BlockSpec(memory_space=pltpu.SMEM),
    )(x, params)
    return out[0, 0]


def reference(x, w, b, rw):
    """Pure-JAX reference with the original (faithful) halving loop."""
    h = x @ w.T + b
    h = jnp.maximum(h @ rw + 1.0, 0.0)
    h = h @ w.T + b
    total = jnp.sum(h)
    abs_total = jnp.sum(jnp.abs(h))

    def cond(c):
        return c[0] > 1.0

    def body(c):
        return (c[0] * 0.5, c[1] * 0.5)

    _, s = lax.while_loop(cond, body, (abs_total, total))
    return s


if __name__ == "__main__":
    key = jax.random.PRNGKey(0)
    k_x, k_w, k_b, k_rw = jax.random.split(key, 4)

    # Input X ~ torch.rand(2, 20)
    x = jax.random.uniform(k_x, (B, F), dtype=jnp.float32)

    # nn.Linear(20, 20): weight/bias ~ U(-1/sqrt(20), 1/sqrt(20)) (PyTorch default)
    bound = 1.0 / float(jnp.sqrt(jnp.float32(F)))
    w = jax.random.uniform(k_w, (F, F), dtype=jnp.float32, minval=-bound, maxval=bound)
    b = jax.random.uniform(k_b, (F,), dtype=jnp.float32, minval=-bound, maxval=bound)

    # self.rand_weight = torch.rand((20, 20)) -- fixed, non-trainable
    rw = jax.random.uniform(k_rw, (F, F), dtype=jnp.float32)

    out = jax.block_until_ready(fixed_hidden_mlp(x, w, b, rw))
    ref = jax.block_until_ready(reference(x, w, b, rw))

    assert jnp.allclose(out, ref, rtol=1e-4, atol=1e-5), (out, ref)
    print("KERNEL_OK")
</pallas_src>

<mosaic_0001>
module attributes {stable_mosaic.version = 11 : i64} {
  func.func @fixed_hidden_mlp_kernel(%arg0: memref<2x20xf32, #tpu.memory_space<vmem>>, %arg1: memref<56x20xf32, #tpu.memory_space<vmem>>, %arg2: memref<1x1xf32, #tpu.memory_space<smem>>) attributes {dimension_semantics = [], scalar_prefetch = 0 : i64, scratch_operands = 0 : i64, tpu.core_type = #tpu.core_type<tc>} {
    %c0 = arith.constant 0 : index
    %c0_0 = arith.constant 0 : index
    %0 = vector.load %arg0[%c0, %c0_0] : memref<2x20xf32, #tpu.memory_space<vmem>>, vector<2x20xf32>
    %c0_1 = arith.constant 0 : index
    %c0_2 = arith.constant 0 : index
    %1 = vector.load %arg1[%c0_1, %c0_2] : memref<56x20xf32, #tpu.memory_space<vmem>>, vector<20x20xf32>
    %c24 = arith.constant 24 : index
    %c0_3 = arith.constant 0 : index
    %2 = vector.load %arg1[%c24, %c0_3] : memref<56x20xf32, #tpu.memory_space<vmem>>, vector<20x20xf32>
    %c48 = arith.constant 48 : index
    %c0_4 = arith.constant 0 : index
    %3 = vector.load %arg1[%c48, %c0_4] : memref<56x20xf32, #tpu.memory_space<vmem>>, vector<1x20xf32>
    %cst = arith.constant dense<0.000000e+00> : vector<2x20xf32>
    %4 = tpu.matmul %0, %1, %cst {dimension_numbers = #tpu.dot_dimension_numbers<[1], [0], [0], [1], [0, 0, 1, 1], [], []>} : vector<2x20xf32>, vector<20x20xf32>, vector<2x20xf32> -> vector<2x20xf32>
    %5 = vector.broadcast %3 : vector<1x20xf32> to vector<2x20xf32>
    %6 = arith.addf %4, %5 : vector<2x20xf32>
    %cst_5 = arith.constant dense<0.000000e+00> : vector<2x20xf32>
    %7 = tpu.matmul %6, %2, %cst_5 {dimension_numbers = #tpu.dot_dimension_numbers<[1], [0], [0], [1], [0, 0, 1, 1], [], []>} : vector<2x20xf32>, vector<20x20xf32>, vector<2x20xf32> -> vector<2x20xf32>
    %cst_6 = arith.constant 1.000000e+00 : f32
    %8 = vector.broadcast %cst_6 : f32 to vector<2x20xf32>
    %9 = arith.addf %7, %8 : vector<2x20xf32>
    %cst_7 = arith.constant 0.000000e+00 : f32
    %10 = vector.broadcast %cst_7 : f32 to vector<2x20xf32>
    %11 = arith.maximumf %9, %10 : vector<2x20xf32>
    %cst_8 = arith.constant dense<0.000000e+00> : vector<2x20xf32>
    %12 = tpu.matmul %11, %1, %cst_8 {dimension_numbers = #tpu.dot_dimension_numbers<[1], [0], [0], [1], [0, 0, 1, 1], [], []>} : vector<2x20xf32>, vector<20x20xf32>, vector<2x20xf32> -> vector<2x20xf32>
    %13 = vector.broadcast %3 : vector<1x20xf32> to vector<2x20xf32>
    %14 = arith.addf %12, %13 : vector<2x20xf32>
    %15 = vector.extract_strided_slice %14 {offsets = [0, 0], sizes = [1, 20], strides = [1, 1]} : vector<2x20xf32> to vector<1x20xf32>
    %16 = vector.extract_strided_slice %14 {offsets = [1, 0], sizes = [1, 20], strides = [1, 1]} : vector<2x20xf32> to vector<1x20xf32>
    %17 = arith.addf %15, %16 : vector<1x20xf32>
    %18 = vector.extract_strided_slice %14 {offsets = [0, 0], sizes = [1, 20], strides = [1, 1]} : vector<2x20xf32> to vector<1x20xf32>
    %19 = math.absf %18 : vector<1x20xf32>
    %20 = vector.extract_strided_slice %14 {offsets = [1, 0], sizes = [1, 20], strides = [1, 1]} : vector<2x20xf32> to vector<1x20xf32>
    %21 = math.absf %20 : vector<1x20xf32>
    %22 = arith.addf %19, %21 : vector<1x20xf32>
    %cst_9 = arith.constant dense<0.000000e+00> : vector<1xf32>
    %23 = vector.multi_reduction <add>, %17, %cst_9 [1] : vector<1x20xf32> to vector<1xf32>
    %24 = vector.shape_cast %23 : vector<1xf32> to vector<1x1xf32>
    %cst_10 = arith.constant dense<0.000000e+00> : vector<1xf32>
    %25 = vector.multi_reduction <add>, %22, %cst_10 [1] : vector<1x20xf32> to vector<1xf32>
    %26 = vector.shape_cast %25 : vector<1xf32> to vector<1x1xf32>
    %27 = math.log %26 : vector<1x1xf32>
    %cst_11 = arith.constant 1.44269502 : f32
    %28 = vector.broadcast %cst_11 : f32 to vector<1x1xf32>
    %29 = arith.mulf %27, %28 : vector<1x1xf32>
    %30 = math.ceil %29 : vector<1x1xf32>
    %cst_12 = arith.constant 0.000000e+00 : f32
    %31 = vector.broadcast %cst_12 : f32 to vector<1x1xf32>
    %32 = arith.maximumf %30, %31 : vector<1x1xf32>
    %cst_13 = arith.constant -0.693147182 : f32
    %33 = vector.broadcast %cst_13 : f32 to vector<1x1xf32>
    %34 = arith.mulf %32, %33 : vector<1x1xf32>
    %35 = math.exp %34 : vector<1x1xf32>
    %36 = arith.mulf %24, %35 : vector<1x1xf32>
    %37 = vector.shape_cast %36 : vector<1x1xf32> to vector<1x1x1xf32>
    %cst_14 = arith.constant dense<0.000000e+00> : vector<1xf32>
    %38 = vector.multi_reduction <add>, %37, %cst_14 [1, 2] : vector<1x1x1xf32> to vector<1xf32>
    %39 = vector.shape_cast %38 : vector<1xf32> to vector<1x1x1xf32>
    %40 = vector.extract %39[0, 0, 0] : f32 from vector<1x1x1xf32>
    %c0_15 = arith.constant 0 : index
    %c0_16 = arith.constant 0 : index
    %41 = memref.load %arg2[%c0_15, %c0_16] : memref<1x1xf32, #tpu.memory_space<smem>>
    memref.store %40, %arg2[%c0_15, %c0_16] : memref<1x1xf32, #tpu.memory_space<smem>>
    return
  }
}

</mosaic_0001>

<bundles_post_ra>
// kernel: tpu_custom_call.1
= control target key start
LH: loop header
LB: loop body
LE: loop exit
PB: predicated region body
PF: predicated region fallthrough
CT: control target
= control target key end

     0   :  { %v371_v2 = vmov 0.0|0.0   ;;  %vm372_vm0 = vmmov 0   ;;  %v373_v5 = vmov 0.0   ;;  %s432_s0 = inlined_call_operand.vmem [shape: f32[2,20], index: 0, kind: input, shape index: {}]   ;;  %s433_s1 = inlined_call_operand.vmem [shape: f32[56,20], index: 1, kind: input, shape index: {}]   ;;  %s434_s2 = inlined_call_operand.hbm [shape: f32[1,1], index: 2, kind: output, shape index: {}]  }
   0x1   :  { %v13_v0 = vld [vmem:[%s433_s1] sm:$0xff]  ;;  %v14_v1 = vld [vmem:[%s433_s1 + $0x8] sm:$0xff]  ;;  %340 = vmatprep.subr.bf16.mxu0 %v371_v2  ;;  %343 = vmatprep.subr.bf16.mxu1 %v371_v2  ;;  %v16_v4 = vld [vmem:[%s433_s1 + $0x18] sm:$0xff] }
   0x2   :  { %v341_v3 = vpack.c.bf16 %v14_v1, %v13_v0  ;;  %319 = vmatprep.mubr.msk.f32.mxu0 %vm372_vm0, %v373_v5  ;;  %v17_v6 = vld [vmem:[%s433_s1 + $0x20] sm:$0xff]  ;;  %328 = vmatprep.mubr.msk.f32.mxu1 %vm372_vm0, %v373_v5 }
   0x3   :  { %7 = vsyncpa [#allocation3], 0  ;;  %v344_v7 = vpack.c.bf16 %v17_v6, %v16_v4  ;;  %v15_v8 = vld [vmem:[%s433_s1 + $0x10] sm:$0xf]  ;;  %vm28_vm1 = vcmask 1043456   ;;  %vm24_vm2 = vcmask 162816  }
   0x4   :  { %342 = vmatpush3.bf16.msra.mxu0 %v341_v3  ;;  %v12_v9 = vld [vmem:[%s432_s0] sm:$0x3]  ;;  %v18_v10 = vld [vmem:[%s433_s1 + $0x28] sm:$0xf]  ;;  %v294_v11 = vld [vmem:[%s433_s1 + $0x30] ss:$0 sm:$0xff] }
   0x5   :  { %317 = vmatprep.subr.mxu0 %v373_v5  ;;  %345 = vmatpush3.bf16.msra.mxu1 %v344_v7  ;;  %vm261_vm3 = vcmask 155648   ;;  %s359_s26 = scalar_lea.hbm %s434_s2, 16 }
   0x6   :  { %326 = vmatprep.subr.mxu1 %v373_v5  ;;  %p360_p0 = scmp.ne.s32.totalorder %s434_s2, %s359_s26  ;;  %p363_p1 = scmp.lt.u32.totalorder %s359_s26, %s434_s2 }
   0x8   :  { %318 = vmatpush3.msk.msra.mxu0 %vm28_vm1, %v15_v8  ;;  %p365_p2 = pnand %p363_p1, %p360_p0 }
   0x9   :  { %320 = vmatmul.mubr.msk.f32.vlgmr.msra.gmra.mrb[0].mxu0 %vm24_vm2, %v12_v9  ;;  %346 = vmatprep.subr.bf16.mxu0 %v371_v2 }
   0xa   :  { %348 = vmatpush3.bf16.msra.mxu0 %v341_v3  ;;  %337 = vmatprep.mubr.msk.f32.mxu0 %vm372_vm0, %v373_v5 }
   0xb   :  { %335 = vmatprep.subr.mxu0 %v373_v5  ;;  %327 = vmatpush3.msk.msra.mxu1 %vm28_vm1, %v18_v10 }
   0xe   :  { %336 = vmatpush3.msk.msra.mxu0 %vm28_vm1, %v15_v8 }
  0xdc   :  { %v98_v12 = vpop.f32.mrb[0].mxu0 }
  0xdd   :  { %v99_v13 = vadd.f32 %v294_v11, %v98_v12  ;;  %v321_v14 = vpop.f32.mrb[1].mxu0 }
  0xdf   :  { %329 = vmatmul.mubr.msk.f32.vlgmr.msra.gmra.mrb[0].mxu1 %vm24_vm2, %v99_v13 }
 0x1b2   :  { %v174_v15 = vpop.f32.mrb[0].mxu1 }
 0x1b3   :  { %v175_v16 = vadd.f32 1.0, %v174_v15  ;;  %v330_v17 = vpop.f32.mrb[1].mxu1 }
 0x1b5   :  { %v178_v18 = vmax.f32 %v175_v16, 0.0 }
 0x1b7   :  { %338 = vmatmul.mubr.msk.f32.vlgmr.msra.gmra.mrb[2].mxu0 %vm24_vm2, %v178_v18 }
 0x28a   :  { %v248_v19 = vpop.f32.mrb[2].mxu0 }
 0x28b   :  { %v249_v20 = vadd.f32 %v294_v11, %v248_v19  ;;  %v339_v21 = vpop.f32.mrb[3].mxu0 }
 0x28d   :  { %v256_v22 = vand.u32 2147483647, %v249_v20  ;;  %v253_v24 = vrot.slane %v249_v20, 1 }
 0x28f   :  { %v258_v23 = vrot.slane %v256_v22, 1  ;;  %v255_v27 = vadd.f32 %v253_v24, %v249_v20 }
 0x291   :  { %v260_v25 = vadd.f32 %v258_v23, %v256_v22  ;;  %v262_v28 = vsel %vm261_vm3, %v255_v27, 0.0 }
 0x293   :  { %v265_v26 = vsel %vm261_vm3, %v260_v25, 0.0 }
 0x294   :  { %266 = vadd.xlane.f32.xlu0 %v265_v26 }
 0x298   :  { %263 = vadd.xlane.f32.xlu0 %v262_v28 }
 0x321   :  { %v267_v29 = vpop.xlane.xlu0 %266 }
 0x322   :  { %355 = vlog2.f32 %v267_v29 }
 0x325   :  { %v264_v38 = vpop.xlane.xlu0 %263 }
 0x32c   :  { %v356_v30 = vpop.eup %355 }
 0x32d   :  { %v269_v31 = vmul.f32 0.6931472, %v356_v30 }
 0x32f   :  { %v270_v32 = vmul.f32 1.442695, %v269_v31 }
 0x331   :  { %v271_v33 = vceil.f32 %v270_v32 }
 0x333   :  { %v272_v34 = vmax.f32 %v271_v33, 0.0 }
 0x335   :  { %v273_v35 = vmul.f32 -0.6931472, %v272_v34 }
 0x337   :  { %v274_v36 = vmul.f32 1.442695, %v273_v35 }
 0x339   :  { %357 = vpow2.f32 %v274_v36 }
 0x343   :  { %v358_v37 = vpop.eup %357 }
 0x344   :  { %v276_v39 = vmul.f32 %v358_v37, %v264_v38 }
 0x346   :  { %349 = vpush %v276_v39 }
 0x377   :  { %s350_s0 = spop %349 }
 0x378   :  { %280 = sst [smem:[#allocation2]] %s350_s0 }
 0x379   :  { %368 = shalt.err (!%p365_p2)
}
 0x37a   :  { %s374_s3 = smov [#allocation2]  }
 0x37b   :  { %288 = dma.smem_to_hbm %s374_s3, 16, %s434_s2, [#allocation3]  }
 0x37c   :  { %369 = dma.done.wait [#allocation3], 16  }
 0x37d   :  { %370 = vsyncadd [#allocation3], 4294967280 }
 0x37e   :  { %292 = sfence }
 0x37f   :  { %293 = vsyncpa [#allocation3], 1 }

</bundles_post_ra>
